<compile_context>
chip_gen: v7x
topology: tpu7x:2x2x1
jax: 0.10.0
libtpu: 0.0.40
codegen_flags: <defaults>
</compile_context>

<pallas_src>
import jax
import jax.numpy as jnp
from jax import lax
from jax.experimental import pallas as pl
from jax.experimental.pallas import tpu as pltpu

_VMEM_LIMIT = 48 * 1024 * 1024   # <= 48 MiB: safe on v7x (64 MiB/TC), ample on v5e/v6e.


def _round_up(x, m):
    return ((x + m - 1) // m) * m


def _pick_tile(total, candidates):
    """Largest candidate tile that evenly divides `total` (glue pads so the
    smallest candidate always divides; full-extent fallback is a safety net)."""
    for t in candidates:
        if total % t == 0:
            return t
    return total


# ------------------ kernel 1: negated KNN squared distances (VPU) -------------

def _knn_negdist_kernel(q_ref, db_ref, out_ref):
    q = q_ref[...]                                   # [TS, C]  target coords
    db = db_ref[...]                                 # [C, TL]  location table tile
    C = q_ref.shape[1]
    d0 = q[:, 0:1] - db[0:1, :]                      # [TS,1] x [1,TL] broadcast (VPU)
    acc = d0 * d0
    for c in range(1, C):                            # C is tiny (2) and static
        dc = q[:, c:c + 1] - db[c:c + 1, :]
        acc = acc + dc * dc
    # Negate in-kernel: this store-bound kernel gets the extra VPU negate for
    # free, and the glue can call approx_max_k directly (no extra XLA pass).
    out_ref[...] = -acc


def knn_neg_distances(q_xy, db_xy_t):
    S, C = q_xy.shape
    L = db_xy_t.shape[1]
    TS = _pick_tile(S, (256, 128, 64, 32, 16))
    TL = _pick_tile(L, (4096, 2048, 1024, 512, 256, 128))
    return pl.pallas_call(
        _knn_negdist_kernel,
        out_shape=jax.ShapeDtypeStruct((S, L), jnp.float32),
        grid=(S // TS, L // TL),
        in_specs=[
            pl.BlockSpec((TS, C), lambda i, j: (i, 0)),
            pl.BlockSpec((C, TL), lambda i, j: (0, j)),
        ],
        out_specs=pl.BlockSpec((TS, TL), lambda i, j: (i, j)),
        compiler_params=pltpu.CompilerParams(
            dimension_semantics=("parallel", "parallel"),
            vmem_limit_bytes=_VMEM_LIMIT),
    )(q_xy, db_xy_t)


# ------------- kernel 2: masked uniform negative sampling (MXU+VPU) -----------

def _neg_sample_kernel(tri_ref, ids_ref, valid_ref, u_ref, neg_ref):
    TS, N = ids_ref.shape
    K = u_ref.shape[1]

    valid_b = valid_ref[...]                                   # [TS, N] bf16 0/1
    count = jnp.sum(valid_b.astype(jnp.float32),
                    axis=-1, keepdims=True)                    # [TS, 1] f32-exact

    # Fallback when every candidate is visited: sample uniformly over all
    # candidates (the original rejection loop would spin forever).
    no_valid = count < 0.5
    valid_eff = jnp.where(no_valid, jnp.ones_like(valid_b), valid_b)   # bf16
    count_eff = jnp.where(no_valid, float(N), count)                   # [TS, 1]

    # Inclusive prefix-count of valid candidates per row, on the MXU. `tri` is
    # a resident input (constant index_map -> DMA'd once), so no per-step
    # iota/compare/cast regeneration.  bf16 0/1 inputs + f32 accumulation are
    # exact for counts up to N.
    # TODO(synk): on v5e a log2(N)-step pltpu.roll+add cumsum would avoid the
    # MXU entirely; kept on the MXU here for simplicity/portability.
    c = jnp.dot(valid_eff, tri_ref[...],
                preferred_element_type=jnp.float32)            # [TS, N]

    # Rank in [1, count]: uniform over the non-visited subset — identical
    # distribution to the original rejection-sampling loop.
    u = u_ref[...]                                             # [TS, K]
    r = jnp.floor(u * count_eff) + 1.0
    r = jnp.minimum(r, count_eff)                              # guard u ~ 1.0

    # ids at invalid positions zeroed once (hoisted out of the K loop).  At the
    # rank-r position, c == r holds on the valid element and on any trailing
    # invalid elements, but the latter contribute 0 to the sum.
    ids_valid = jnp.where(valid_eff > 0.5, ids_ref[...], 0)    # [TS, N] int32

    for k in range(K):                                         # K small & static
        rk = r[:, k:k + 1]                                     # [TS, 1]
        pick = jnp.sum(jnp.where(c == rk, ids_valid, 0),
                       axis=-1, keepdims=True)                 # [TS, 1] int32
        neg_ref[:, k:k + 1] = pick


def negative_sample(tri, nearby_ids, valid, u):
    S, N = nearby_ids.shape
    K = u.shape[1]
    TS = _pick_tile(S, (128, 64, 32, 16))                      # capped (v7x VMEM)
    return pl.pallas_call(
        _neg_sample_kernel,
        out_shape=jax.ShapeDtypeStruct((S, K), jnp.int32),
        grid=(S // TS,),
        in_specs=[
            pl.BlockSpec((N, N), lambda i: (0, 0)),            # tri: resident
            pl.BlockSpec((TS, N), lambda i: (i, 0)),
            pl.BlockSpec((TS, N), lambda i: (i, 0)),
            pl.BlockSpec((TS, K), lambda i: (i, 0)),
        ],
        out_specs=pl.BlockSpec((TS, K), lambda i: (i, 0)),
        compiler_params=pltpu.CompilerParams(
            dimension_semantics=("parallel",),
            vmem_limit_bytes=_VMEM_LIMIT),
    )(tri, nearby_ids, valid, u)


# ------------------------------- forward glue ---------------------------------

def knn_sampler_forward(trg_seq, k, user, loc_coords, user_visited_mask,
                        num_nearest, exclude_visited, key):
    S = trg_seq.shape[0]
    L = loc_coords.shape[0]
    N = num_nearest

    trg_loc = trg_seq[:, 1]                                    # check_in[1] == target loc
    q_xy = loc_coords[trg_loc].astype(jnp.float32)             # [S, 2]
    db = loc_coords.astype(jnp.float32)                        # [L, 2]

    # Pad S (sublane: 16 covers f32 and bf16 native tiles) and L (lane: 128) so
    # Pallas tiles always divide evenly — no silent full-extent tile fallback.
    S_pad = _round_up(S, 16)
    L_pad = _round_up(L, 128)
    if S_pad != S:
        q_xy = jnp.concatenate(
            [q_xy, jnp.broadcast_to(q_xy[:1], (S_pad - S, q_xy.shape[1]))], axis=0)
    if L_pad != L:
        far = jnp.full((L_pad - L, db.shape[1]), 1.0e6, jnp.float32)  # never selected
        db = jnp.concatenate([db, far], axis=0)
    db_t = db.T                                                # [2, L_pad]

    neg_dist = knn_neg_distances(q_xy, db_t)[:S]               # [S, L_pad], negated

    # TPU-native partial top-k instead of a full sort over [S, L].
    # TODO(synk): fusing the per-row selection into the distance kernel (so
    # [S, L] is never materialized) needs an in-kernel streaming top-N merge
    # across L tiles; kept in XLA for now.
    _, nearby = lax.approx_max_k(neg_dist, N)
    nearby = nearby.astype(jnp.int32)                          # [S, N] candidate ids

    if exclude_visited:
        visited = user_visited_mask[user]                      # [L] bool
        valid = (~visited[nearby]).astype(jnp.bfloat16)        # bf16 halves HBM stream
    else:
        valid = jnp.ones((S, N), jnp.bfloat16)

    u = jax.random.uniform(key, (S, k), dtype=jnp.float32)

    # Pad candidate axis to a lane multiple and rows back to S_pad for kernel 2.
    N_pad = _round_up(N, 128)
    if N_pad != N:
        nearby = jnp.concatenate(
            [nearby, jnp.broadcast_to(nearby[:, :1], (S, N_pad - N))], axis=1)
        valid = jnp.concatenate(
            [valid, jnp.zeros((S, N_pad - N), jnp.bfloat16)], axis=1)
    if S_pad != S:
        nearby = jnp.concatenate(
            [nearby, jnp.zeros((S_pad - S, N_pad), jnp.int32)], axis=0)
        valid = jnp.concatenate(
            [valid, jnp.ones((S_pad - S, N_pad), jnp.bfloat16)], axis=0)
        u = jnp.concatenate(
            [u, jnp.full((S_pad - S, k), 0.5, jnp.float32)], axis=0)

    # Upper-triangular prefix matrix: built once here, kept resident in VMEM by
    # kernel 2 (constant index_map) — not regenerated per grid step.
    ar = jnp.arange(N_pad, dtype=jnp.int32)
    tri = (ar[:, None] <= ar[None, :]).astype(jnp.bfloat16)    # tri[j, n] = (j <= n)

    neg_samples = negative_sample(tri, nearby, valid, u)[:S]   # [S, k] int32 (Pallas)
    probs = jnp.ones((S, k), jnp.float32)                      # constant; no kernel output
    return neg_samples, probs


# ----------------------------------- demo --------------------------------------

if __name__ == "__main__":
    key = jax.random.PRNGKey(0)
    k_locs, k_seq, k_vis, k_u = jax.random.split(key, 4)

    num_locs = 512      # size of the synthetic location universe
    num_users = 3
    seq_len = 8         # number of target check-ins
    num_nearest = 128   # small-scale stand-in for 2000
    k_neg = 8           # negatives per check-in
    user = 1

    # Deterministic synthetic "query_sys": 2-D coordinates for every location.
    loc_coords = jax.random.uniform(k_locs, (num_locs, 2), dtype=jnp.float32)

    # trg_seq: [S, 2] check-ins, column 1 holds the target location id.
    trg_loc_ids = jax.random.randint(k_seq, (seq_len,), 0, num_locs, dtype=jnp.int32)
    trg_seq = jnp.stack([jnp.arange(seq_len, dtype=jnp.int32), trg_loc_ids], axis=1)

    # user_visited_locs: per-user boolean visited mask (~20% visited).
    user_visited_mask = jax.random.bernoulli(k_vis, 0.2, (num_users, num_locs))

    neg_samples, probs = knn_sampler_forward(
        trg_seq, k_neg, user, loc_coords, user_visited_mask,
        num_nearest=num_nearest, exclude_visited=True, key=k_u)

    jax.block_until_ready((neg_samples, probs))

    assert neg_samples.shape == (seq_len, k_neg) and neg_samples.dtype == jnp.int32
    assert probs.shape == (seq_len, k_neg) and probs.dtype == jnp.float32
    # Sanity: no sampled negative is in the user's visited set.
    assert not bool(jnp.any(user_visited_mask[user][neg_samples]))
    assert bool(jnp.all(probs == 1.0))

    print("KERNEL_OK")
</pallas_src>

<mosaic_0001>
module attributes {stable_mosaic.version = 11 : i64} {
  func.func @_knn_negdist_kernel(%arg0: i32, %arg1: i32, %arg2: memref<16x2xf32, #tpu.memory_space<vmem>>, %arg3: memref<2x512xf32, #tpu.memory_space<vmem>>, %arg4: memref<16x512xf32, #tpu.memory_space<vmem>>) attributes {dimension_semantics = [#tpu.dimension_semantics<parallel>, #tpu.dimension_semantics<parallel>], iteration_bounds = array<i64: 1, 1>, scalar_prefetch = 0 : i64, scratch_operands = 0 : i64, tpu.core_type = #tpu.core_type<tc>, window_params = [{transform_indices = @transform_0, window_bounds = array<i64: 16, 2>}, {transform_indices = @transform_1, window_bounds = array<i64: 2, 512>}, {transform_indices = @transform_2, window_bounds = array<i64: 16, 512>}]} {
    %c0 = arith.constant 0 : index
    %c0_0 = arith.constant 0 : index
    %0 = vector.load %arg2[%c0, %c0_0] : memref<16x2xf32, #tpu.memory_space<vmem>>, vector<16x2xf32>
    %c0_1 = arith.constant 0 : index
    %c0_2 = arith.constant 0 : index
    %1 = vector.load %arg3[%c0_1, %c0_2] : memref<2x512xf32, #tpu.memory_space<vmem>>, vector<2x512xf32>
    %2 = vector.extract_strided_slice %0 {offsets = [0, 0], sizes = [16, 1], strides = [1, 1]} : vector<16x2xf32> to vector<16x1xf32>
    %3 = vector.extract_strided_slice %1 {offsets = [0, 0], sizes = [1, 512], strides = [1, 1]} : vector<2x512xf32> to vector<1x512xf32>
    %4 = vector.broadcast %2 : vector<16x1xf32> to vector<16x512xf32>
    %5 = vector.broadcast %3 : vector<1x512xf32> to vector<16x512xf32>
    %6 = arith.subf %4, %5 : vector<16x512xf32>
    %7 = arith.mulf %6, %6 : vector<16x512xf32>
    %8 = vector.extract_strided_slice %0 {offsets = [0, 1], sizes = [16, 1], strides = [1, 1]} : vector<16x2xf32> to vector<16x1xf32>
    %9 = vector.extract_strided_slice %1 {offsets = [1, 0], sizes = [1, 512], strides = [1, 1]} : vector<2x512xf32> to vector<1x512xf32>
    %10 = vector.broadcast %8 : vector<16x1xf32> to vector<16x512xf32>
    %11 = vector.broadcast %9 : vector<1x512xf32> to vector<16x512xf32>
    %12 = arith.subf %10, %11 : vector<16x512xf32>
    %13 = arith.mulf %12, %12 : vector<16x512xf32>
    %14 = arith.addf %7, %13 : vector<16x512xf32>
    %cst = arith.constant 0.000000e+00 : f32
    %15 = vector.broadcast %cst : f32 to vector<16x512xf32>
    %16 = arith.subf %15, %14 : vector<16x512xf32>
    %c0_3 = arith.constant 0 : index
    %c0_4 = arith.constant 0 : index
    %17 = vector.load %arg4[%c0_3, %c0_4] : memref<16x512xf32, #tpu.memory_space<vmem>>, vector<16x512xf32>
    tpu.vector_store %arg4[%c0_3, %c0_4], %16 {strides = array<i32>} : memref<16x512xf32, #tpu.memory_space<vmem>>, vector<16x512xf32>,
    return
  }
  func.func @transform_0(%arg0: i32, %arg1: i32) -> (i32, i32) {
    %c0_i32 = arith.constant 0 : i32
    %c0_i32_0 = arith.constant 0 : i32
    return %arg0, %c0_i32 : i32, i32
  }
  func.func @transform_1(%arg0: i32, %arg1: i32) -> (i32, i32) {
    %c0_i32 = arith.constant 0 : i32
    %c0_i32_0 = arith.constant 0 : i32
    return %c0_i32, %arg1 : i32, i32
  }
  func.func @transform_2(%arg0: i32, %arg1: i32) -> (i32, i32) {
    %c0_i32 = arith.constant 0 : i32
    return %arg0, %arg1 : i32, i32
  }
}

</mosaic_0001>

<bundles_post_ra>
// kernel: tpu_custom_call.1
= control target key start
LH: loop header
LB: loop body
LE: loop exit
PB: predicated region body
PF: predicated region fallthrough
CT: control target
= control target key end

     0   :  { %v210_v1 = vmov 1   ;;  %v211_v2 = vmov 0   ;;  %s251_s0 = inlined_call_operand.vmem [shape: f32[16,2], index: 0, kind: input, shape index: {}]   ;;  %s252_s1 = inlined_call_operand.vmem [shape: f32[2,512], index: 1, kind: input, shape index: {}]   ;;  %s253_s2 = inlined_call_operand.hbm [shape: f32[16,512], index: 2, kind: output, shape index: {}]  }
   0x1   :  { %v12_v0 = vld [vmem:[%s251_s0] sm:$0xff]  ;;  %184 = vset.pattern.permute.xlu1 %v210_v1  ;;  %183 = vset.pattern.permute.xlu0 %v211_v2 }
   0x2   :  { %7 = vsyncpa [#allocation3], 0  ;;  %79 = vperm.xlu1 %184, %v12_v0   ;;  %17 = vperm.xlu0 %183, %v12_v0   ;;  %v13_v3 = vld [vmem:[%s251_s0 + $0x8] sm:$0xff]  ;;  %v26_v4 = vlaneseq  ;;  %v14_v10 = vld [vmem:[%s252_s1] sm:$0xff]  ;;  %s212_s0 = smov [#allocation2]  }
   0x3   :  { %s167_s1 = sshll.u32 %s212_s0, 4  ;;  %s168_s1 = int_to_ptr.vmem [resolvable:$true] %s167_s1 }
   0x4   :  { %v27_v5 = vshrl.u32 %v26_v4, 7  ;;  %s186_s15 = scalar_lea.vmem %s168_s1, 1024  ;;  %p191_p1 = scmp.lt.s32.totalorder %s168_s1, %s168_s1 }
   0x5   :  { %p187_p0 = scmp.ne.s32.totalorder %s168_s1, %s186_s15  ;;  %p192_p2 = scmp.lt.s32.totalorder %s186_s15, %s186_s15 }
   0x6   :  { %83 = vperm.xlu1 %184, %v13_v3   ;;  %22 = vperm.xlu0 %183, %v13_v3   ;;  %v88_v6 = vsub.s32 1, %v27_v5  ;;  %v92_v7 = vsub.s32 3, %v27_v5  ;;  %v96_v8 = vsub.s32 5, %v27_v5  ;;  %v100_v9 = vsub.s32 7, %v27_v5 }
   0x7   :  { %v28_v11 = vsub.s32 0, %v27_v5  ;;  %v32_v12 = vsub.s32 2, %v27_v5  ;;  %v36_v13 = vsub.s32 4, %v27_v5  ;;  %v40_v14 = vsub.s32 6, %v27_v5  ;;  %p193_p3 = por %p192_p2, %p191_p1 }
   0x8   :  { %v89_v15 = vrot.slane %v14_v10, %v88_v6  ;;  %v93_v16 = vrot.slane %v14_v10, %v92_v7  ;;  %v97_v17 = vrot.slane %v14_v10, %v96_v8  ;;  %v101_v18 = vrot.slane %v14_v10, %v100_v9 }
   0x9   :  { %v29_v19 = vrot.slane %v14_v10, %v28_v11  ;;  %v33_v20 = vrot.slane %v14_v10, %v32_v12  ;;  %v37_v21 = vrot.slane %v14_v10, %v36_v13  ;;  %v41_v22 = vrot.slane %v14_v10, %v40_v14  ;;  %p194_p4 = pnand %p193_p3, %p187_p0 }
   0xa   :  { %185 = vset.pattern.permute.xlu0 %v210_v1  ;;  %v109_v23 = vrot.slane %v89_v15, %v88_v6  ;;  %v113_v24 = vrot.slane %v93_v16, %v88_v6  ;;  %v117_v25 = vrot.slane %v97_v17, %v88_v6  ;;  %v121_v26 = vrot.slane %v101_v18, %v88_v6 }
   0xb   :  { %v49_v27 = vrot.slane %v29_v19, %v28_v11  ;;  %v53_v28 = vrot.slane %v33_v20, %v28_v11  ;;  %v57_v29 = vrot.slane %v37_v21, %v28_v11  ;;  %v61_v30 = vrot.slane %v41_v22, %v28_v11 }
  0x81   :  { %v80_v31 = vpop.permute.xlu1 %79  ;;  %v18_v32 = vpop.permute.xlu0 %17 }
  0x82   :  { %v122_v33 = vsub.f32 %v80_v31, %v109_v23  ;;  %v123_v34 = vsub.f32 %v80_v31, %v113_v24  ;;  %v124_v35 = vsub.f32 %v80_v31, %v117_v25  ;;  %v125_v36 = vsub.f32 %v80_v31, %v121_v26 }
  0x83   :  { %v62_v37 = vsub.f32 %v18_v32, %v49_v27  ;;  %v63_v38 = vsub.f32 %v18_v32, %v53_v28  ;;  %v64_v39 = vsub.f32 %v18_v32, %v57_v29  ;;  %v65_v40 = vsub.f32 %v18_v32, %v61_v30 }
  0x84   :  { %v130_v41 = vmul.f32 %v122_v33, %v122_v33  ;;  %v131_v42 = vmul.f32 %v123_v34, %v123_v34  ;;  %v132_v43 = vmul.f32 %v124_v35, %v124_v35  ;;  %v133_v44 = vmul.f32 %v125_v36, %v125_v36 }
  0x85   :  { %v84_v45 = vpop.permute.xlu1 %83  ;;  %v70_v46 = vmul.f32 %v62_v37, %v62_v37  ;;  %v71_v47 = vmul.f32 %v63_v38, %v63_v38  ;;  %v72_v48 = vmul.f32 %v64_v39, %v64_v39  ;;  %v73_v49 = vmul.f32 %v65_v40, %v65_v40  ;;  %v23_v58 = vpop.permute.xlu0 %22 }
  0x86   :  { %v126_v50 = vsub.f32 %v84_v45, %v109_v23  ;;  %v127_v51 = vsub.f32 %v84_v45, %v113_v24  ;;  %v128_v52 = vsub.f32 %v84_v45, %v117_v25  ;;  %v129_v53 = vsub.f32 %v84_v45, %v121_v26 }
  0x87   :  { %v138_v54 = vadd.f32 %v130_v41, %v70_v46  ;;  %v139_v55 = vadd.f32 %v131_v42, %v71_v47  ;;  %v140_v56 = vadd.f32 %v132_v43, %v72_v48  ;;  %v141_v57 = vadd.f32 %v133_v44, %v73_v49 }
  0x88   :  { %v134_v59 = vmul.f32 %v126_v50, %v126_v50  ;;  %v135_v60 = vmul.f32 %v127_v51, %v127_v51  ;;  %v136_v61 = vmul.f32 %v128_v52, %v128_v52  ;;  %v137_v62 = vmul.f32 %v129_v53, %v129_v53 }
  0x89   :  { %v146_v63 = vsub.f32 0.0, %v138_v54  ;;  %v147_v0 = vsub.f32 0.0, %v139_v55  ;;  %v148_v1 = vsub.f32 0.0, %v140_v56  ;;  %v149_v2 = vsub.f32 0.0, %v141_v57 }
  0x8a   :  { %v66_v3 = vsub.f32 %v23_v58, %v49_v27  ;;  %v67_v4 = vsub.f32 %v23_v58, %v53_v28  ;;  %v68_v5 = vsub.f32 %v23_v58, %v57_v29  ;;  %v69_v6 = vsub.f32 %v23_v58, %v61_v30 }
  0x8b   :  { %154 = vst [vmem:[#allocation2] sm:$0xff] %v146_v63  ;;  %155 = vst [vmem:[#allocation2 + $0x8] sm:$0xff] %v147_v0 }
  0x8c   :  { %156 = vst [vmem:[#allocation2 + $0x10] sm:$0xff] %v148_v1  ;;  %157 = vst [vmem:[#allocation2 + $0x18] sm:$0xff] %v149_v2  ;;  %v74_v7 = vmul.f32 %v66_v3, %v66_v3  ;;  %v75_v8 = vmul.f32 %v67_v4, %v67_v4  ;;  %v76_v9 = vmul.f32 %v68_v5, %v68_v5 }
  0x8d   :  { %v77_v10 = vmul.f32 %v69_v6, %v69_v6 }
  0x8e   :  { %v142_v11 = vadd.f32 %v134_v59, %v74_v7  ;;  %v143_v12 = vadd.f32 %v135_v60, %v75_v8  ;;  %v144_v13 = vadd.f32 %v136_v61, %v76_v9 }
  0x8f   :  { %v145_v14 = vadd.f32 %v137_v62, %v77_v10 }
  0x90   :  { %v150_v15 = vsub.f32 0.0, %v142_v11  ;;  %v151_v16 = vsub.f32 0.0, %v143_v12  ;;  %v152_v17 = vsub.f32 0.0, %v144_v13 }
  0x91   :  { %v153_v18 = vsub.f32 0.0, %v145_v14 }
  0x92   :  { %158 = vst [vmem:[#allocation2 + $0x20] sm:$0xff] %v150_v15  ;;  %159 = vst [vmem:[#allocation2 + $0x28] sm:$0xff] %v151_v16 }
  0x93   :  { %160 = vst [vmem:[#allocation2 + $0x30] sm:$0xff] %v152_v17  ;;  %161 = vst [vmem:[#allocation2 + $0x38] sm:$0xff] %v153_v18 }
  0x94   :  { %197 = shalt.err (!%p194_p4)
}
  0x95   :  { %s198_s18 = scalar_lea.hbm %s253_s2, 1024 }
  0x96   :  { %p199_p5 = scmp.ne.s32.totalorder %s253_s2, %s198_s18  ;;  %p202_p6 = scmp.lt.u32.totalorder %s198_s18, %s253_s2 }
  0x98   :  { %p204_p7 = pnand %p202_p6, %p199_p5 }
  0x9a   :  { %207 = shalt.err (!%p204_p7)
}
  0x9b   :  { %s213_s23 = smov 512   ;;  %s214_s24 = smov 32  }
  0x9c   :  { %173 = dma.vmem_to_hbm [thread:$0]  %s168_s1, 1024, %s253_s2, [#allocation3], %s213_s23, %s213_s23, %s214_s24  }
  0x9d   :  { %208 = dma.done.wait [#allocation3], 1024  }
  0x9e   :  { %209 = vsyncadd [#allocation3], 4294966272 }
  0x9f   :  { %177 = vsyncpa [#allocation3], 1 }

</bundles_post_ra>
